<compile_context>
chip_gen: v5e
topology: v5e:2x2
jax: 0.10.0
libtpu: 0.0.40
codegen_flags: <defaults>
</compile_context>

<pallas_src>
import functools

import jax
import jax.numpy as jnp
from jax import lax
from jax.experimental import pallas as pl
from jax.experimental.pallas import tpu as pltpu

LN_EPS = 1e-12


# ------------------------------------------------------------------
# helpers
# ------------------------------------------------------------------
def _gelu(x):
    # BERT GELU, tanh formulation: transcendental goes to the EUP slot.
    # TODO(synk): HF BERT's default 'gelu' is the exact erf form; tanh deviates at ~1e-3 level.
    c = 0.7978845608028654  # sqrt(2/pi)
    return 0.5 * x * (1.0 + jnp.tanh(c * (x + 0.044715 * x * x * x)))


def _layernorm_f32(y, g, b, eps):
    mean = jnp.mean(y, axis=-1, keepdims=True)
    yc = y - mean
    var = jnp.mean(yc * yc, axis=-1, keepdims=True)
    return yc * lax.rsqrt(var + eps) * g + b


def _choose_block(n, target, mult):
    """Largest tile <= target that divides n and is a multiple of `mult` (else full n)."""
    if n <= target or n % mult != 0:
        return n
    b = (target // mult) * mult
    while n % b != 0:
        b -= mult
    return b


def _params(*sem):
    return pltpu.CompilerParams(dimension_semantics=sem)


# ------------------------------------------------------------------
# Pallas kernels
# ------------------------------------------------------------------
def _qkv_kernel(x_ref, w_ref, b_ref, q_ref, kv_ref, *, hidden):
    # y = x @ [Wq|Wk|Wv] + b ; split into q and kv outputs (both bf16).
    y = jnp.dot(x_ref[...], w_ref[...], preferred_element_type=jnp.float32) + b_ref[...]
    y = y.astype(q_ref.dtype)
    q_ref[...] = y[:, :hidden]
    kv_ref[...] = y[:, hidden:]


def qkv_projection(x, w, b, hidden, block_m=512):
    """x: (M, H) bf16, w: (H, 3H) bf16 -> q (M, H) bf16, kv (M, 2H) bf16."""
    M, K = x.shape
    _, N = w.shape
    bm = _choose_block(M, block_m, 8)
    kernel = functools.partial(_qkv_kernel, hidden=hidden)
    # TODO(synk): for BERT-large on v7x add an N grid axis so the (K, 3H) weight tile shrinks.
    return pl.pallas_call(
        kernel,
        out_shape=(jax.ShapeDtypeStruct((M, hidden), jnp.bfloat16),
                   jax.ShapeDtypeStruct((M, 2 * hidden), jnp.bfloat16)),
        grid=(M // bm,),
        in_specs=[
            pl.BlockSpec((bm, K), lambda i: (i, 0)),
            pl.BlockSpec((K, N), lambda i: (0, 0)),
            pl.BlockSpec((1, N), lambda i: (0, 0)),
        ],
        out_specs=[
            pl.BlockSpec((bm, hidden), lambda i: (i, 0)),
            pl.BlockSpec((bm, 2 * hidden), lambda i: (i, 0)),
        ],
        compiler_params=_params("parallel"),
    )(x, w, b.reshape(1, N))


def _attn_wo_ln_kernel(q_ref, kv_ref, bias_ref, res_ref, wo_ref, bo_ref, g_ref, be_ref,
                       o_ref, *, num_heads, head_dim, hidden, eps):
    # One grid step = one (batch row, query block); all heads, fused Wo + residual + LN.
    bias = bias_ref[...]                                  # (1, S) additive mask bias, f32
    tq = q_ref.shape[0]
    acc = jnp.zeros((tq, hidden), jnp.float32)
    dims = (((1,), (1,)), ((), ()))                       # contract last dims, no batch dims
    # TODO(synk): head_dim=64 slices split the 128-lane vreg; pair heads or emit a
    # (B, nH, S, d) QKV layout from the projection for fully lane-dense loads.
    for h in range(num_heads):                            # static unroll over heads
        lo, hi = h * head_dim, (h + 1) * head_dim
        qh = q_ref[:, lo:hi]                              # (tq, d) bf16
        kh = kv_ref[:, lo:hi]                             # (S, d)  bf16
        vh = kv_ref[:, hidden + lo:hidden + hi]           # (S, d)  bf16
        # 1/sqrt(d) is folded into Wq at init; no explicit transpose (MXU-only contraction).
        s = lax.dot_general(qh, kh, dims, preferred_element_type=jnp.float32) + bias
        s = s - jnp.max(s, axis=-1, keepdims=True)
        p = jnp.exp(s)
        p = p * pl.reciprocal(jnp.sum(p, axis=-1, keepdims=True), approx=True)
        ctx = jnp.dot(p.astype(jnp.bfloat16), vh, preferred_element_type=jnp.float32)
        # fuse Wo: acc += ctx_h @ Wo[h*d:(h+1)*d, :]  (no lane-axis concat, ctx consumed now)
        acc = acc + jnp.dot(ctx.astype(jnp.bfloat16), wo_ref[lo:hi, :],
                            preferred_element_type=jnp.float32)
    y = acc + bo_ref[...] + res_ref[...].astype(jnp.float32)
    o_ref[...] = _layernorm_f32(y, g_ref[...], be_ref[...], eps).astype(o_ref.dtype)


def attention_block(q, kv, mask_bias, residual, wo, bo, gamma, beta,
                    num_heads, eps=LN_EPS, block_q=256):
    """q: (B,S,H) bf16, kv: (B,S,2H) bf16, mask_bias: (B,1,S) f32, residual: (B,S,H) bf16."""
    B, S, H = q.shape
    d = H // num_heads
    tq = _choose_block(S, block_q, 8)
    kernel = functools.partial(_attn_wo_ln_kernel, num_heads=num_heads,
                               head_dim=d, hidden=H, eps=eps)
    # TODO(synk): for S >= ~2048 switch to a KV-blocked flash-style online softmax.
    return pl.pallas_call(
        kernel,
        out_shape=jax.ShapeDtypeStruct((B, S, H), jnp.bfloat16),
        grid=(B, S // tq),
        in_specs=[
            pl.BlockSpec((None, tq, H), lambda b, qi: (b, qi, 0)),       # q tile
            pl.BlockSpec((None, S, 2 * H), lambda b, qi: (b, 0, 0)),     # full K|V for this row
            pl.BlockSpec((None, 1, S), lambda b, qi: (b, 0, 0)),         # mask bias
            pl.BlockSpec((None, tq, H), lambda b, qi: (b, qi, 0)),       # residual
            pl.BlockSpec((H, H), lambda b, qi: (0, 0)),                  # Wo
            pl.BlockSpec((1, H), lambda b, qi: (0, 0)),                  # bo
            pl.BlockSpec((1, H), lambda b, qi: (0, 0)),                  # ln gamma
            pl.BlockSpec((1, H), lambda b, qi: (0, 0)),                  # ln beta
        ],
        out_specs=pl.BlockSpec((None, tq, H), lambda b, qi: (b, qi, 0)),
        compiler_params=_params("parallel", "parallel"),
    )(q, kv, mask_bias, residual, wo, bo.reshape(1, H),
      gamma.reshape(1, H), beta.reshape(1, H))


def _ffn_kernel(x_ref, w1_ref, b1_ref, w2_ref, b2_ref, g_ref, be_ref, o_ref, acc_ref, *, eps):
    # Fused FFN: GELU(x@w1 + b1) @ w2 + b2 + x, then LayerNorm.  I is tiled on grid axis 1.
    @pl.when(pl.program_id(1) == 0)
    def _():
        acc_ref[...] = jnp.zeros_like(acc_ref)

    x = x_ref[...]                                                     # (bm, H) bf16
    h = jnp.dot(x, w1_ref[...], preferred_element_type=jnp.float32) + b1_ref[...]
    h = _gelu(h)
    acc_ref[...] += jnp.dot(h.astype(jnp.bfloat16), w2_ref[...],
                            preferred_element_type=jnp.float32)

    @pl.when(pl.program_id(1) == pl.num_programs(1) - 1)
    def _():
        y = acc_ref[...] + b2_ref[...] + x.astype(jnp.float32)         # + residual
        o_ref[...] = _layernorm_f32(y, g_ref[...], be_ref[...], eps).astype(o_ref.dtype)


def ffn_block(x, w1, b1, w2, b2, gamma, beta, eps=LN_EPS, block_m=512, block_i=1024):
    """x: (M, H) bf16; w1: (H, I) bf16; w2: (I, H) bf16.  Intermediate never touches HBM."""
    M, H = x.shape
    _, I = w1.shape
    bm = _choose_block(M, block_m, 8)
    bi = _choose_block(I, block_i, 128)
    kernel = functools.partial(_ffn_kernel, eps=eps)
    return pl.pallas_call(
        kernel,
        out_shape=jax.ShapeDtypeStruct((M, H), jnp.bfloat16),
        grid=(M // bm, I // bi),
        in_specs=[
            pl.BlockSpec((bm, H), lambda i, k: (i, 0)),
            pl.BlockSpec((H, bi), lambda i, k: (0, k)),
            pl.BlockSpec((1, bi), lambda i, k: (0, k)),
            pl.BlockSpec((bi, H), lambda i, k: (k, 0)),
            pl.BlockSpec((1, H), lambda i, k: (0, 0)),
            pl.BlockSpec((1, H), lambda i, k: (0, 0)),
            pl.BlockSpec((1, H), lambda i, k: (0, 0)),
        ],
        out_specs=pl.BlockSpec((bm, H), lambda i, k: (i, 0)),
        scratch_shapes=[pltpu.VMEM((bm, H), jnp.float32)],
        compiler_params=_params("parallel", "arbitrary"),
    )(x, w1, b1.reshape(1, I), w2, b2.reshape(1, H),
      gamma.reshape(1, H), beta.reshape(1, H))


def _ln_kernel(x_ref, g_ref, b_ref, o_ref, *, eps):
    x = x_ref[...].astype(jnp.float32)
    o_ref[...] = _layernorm_f32(x, g_ref[...], b_ref[...], eps).astype(o_ref.dtype)


def layernorm(x, gamma, beta, eps=LN_EPS, block_m=512):
    """Embedding LayerNorm: f32 input, bf16 output."""
    M, H = x.shape
    bm = _choose_block(M, block_m, 8)
    kernel = functools.partial(_ln_kernel, eps=eps)
    return pl.pallas_call(
        kernel,
        out_shape=jax.ShapeDtypeStruct((M, H), jnp.bfloat16),
        grid=(M // bm,),
        in_specs=[
            pl.BlockSpec((bm, H), lambda i: (i, 0)),
            pl.BlockSpec((1, H), lambda i: (0, 0)),
            pl.BlockSpec((1, H), lambda i: (0, 0)),
        ],
        out_specs=pl.BlockSpec((bm, H), lambda i: (i, 0)),
        compiler_params=_params("parallel"),
    )(x, gamma.reshape(1, H), beta.reshape(1, H))


# ------------------------------------------------------------------
# Parameter init (deterministic, synthetic "state_dict")
# ------------------------------------------------------------------
def init_params(key, cfg):
    H, I = cfg["hidden_size"], cfg["intermediate_size"]
    d = H // cfg["num_heads"]
    scale = 1.0 / float(d) ** 0.5

    def normal(k, shape, std=0.02):
        return std * jax.random.normal(k, shape, dtype=jnp.float32)

    keys = iter(jax.random.split(key, 8 + 6 * cfg["num_layers"]))
    params = {
        "word_emb": normal(next(keys), (cfg["vocab_size"], H)),
        "pos_emb": normal(next(keys), (cfg["max_position"], H)),
        "type_emb": normal(next(keys), (cfg["type_vocab_size"], H)),
        "emb_ln_g": jnp.ones((H,), jnp.float32),
        "emb_ln_b": jnp.zeros((H,), jnp.float32),
        "fc_w": normal(next(keys), (H, cfg["num_labels"])),
        "fc_b": jnp.zeros((cfg["num_labels"],), jnp.float32),
        "layers": [],
    }
    for _ in range(cfg["num_layers"]):
        # 1/sqrt(head_dim) folded into Wq (and would be folded into the Q bias if nonzero),
        # so the attention kernel never multiplies scores by the scale.
        wq = normal(next(keys), (H, H)) * scale
        wk = normal(next(keys), (H, H))
        wv = normal(next(keys), (H, H))
        layer = {
            "w_qkv": jnp.concatenate([wq, wk, wv], axis=1).astype(jnp.bfloat16),
            "b_qkv": jnp.zeros((3 * H,), jnp.float32),
            "wo": normal(next(keys), (H, H)).astype(jnp.bfloat16),
            "bo": jnp.zeros((H,), jnp.float32),
            "ln1_g": jnp.ones((H,), jnp.float32), "ln1_b": jnp.zeros((H,), jnp.float32),
            "w1": normal(next(keys), (H, I)).astype(jnp.bfloat16),
            "b1": jnp.zeros((I,), jnp.float32),
            "w2": normal(next(keys), (I, H)).astype(jnp.bfloat16),
            "b2": jnp.zeros((H,), jnp.float32),
            "ln2_g": jnp.ones((H,), jnp.float32), "ln2_b": jnp.zeros((H,), jnp.float32),
        }
        params["layers"].append(layer)
    return params


# ------------------------------------------------------------------
# Forward pass (BioBERTModel.forward, inference mode)
# ------------------------------------------------------------------
def biobert_forward(params, input_ids, token_type_ids, attention_mask, cfg):
    B, S = input_ids.shape
    H, nH = cfg["hidden_size"], cfg["num_heads"]

    # --- embeddings (gathers are glue; run in plain JAX) ---
    emb = (params["word_emb"][input_ids]
           + params["pos_emb"][jnp.arange(S)][None, :, :]
           + params["type_emb"][token_type_ids])                         # (B, S, H) f32
    x = layernorm(emb.reshape(B * S, H), params["emb_ln_g"], params["emb_ln_b"])  # bf16
    # hidden_dropout_prob dropout is identity at inference.

    # extended attention mask additive bias, as in BertModel: (1 - mask) * -10000
    mask_bias = ((1.0 - attention_mask.astype(jnp.float32)) * -10000.0).reshape(B, 1, S)

    for layer in params["layers"]:
        q, kv = qkv_projection(x, layer["w_qkv"], layer["b_qkv"], H)      # bf16, bf16
        x = attention_block(q.reshape(B, S, H), kv.reshape(B, S, 2 * H), mask_bias,
                            x.reshape(B, S, H), layer["wo"], layer["bo"],
                            layer["ln1_g"], layer["ln1_b"], nH)           # (B, S, H) bf16
        x = x.reshape(B * S, H)
        x = ffn_block(x, layer["w1"], layer["b1"], layer["w2"], layer["b2"],
                      layer["ln2_g"], layer["ln2_b"])                     # (B*S, H) bf16

    # encoded_layer[-1] -> dropout(p=0.3) (identity at inference) -> fc
    # The num_labels=5 projection is a tiny GEMV; plain JAX avoids masked 5-lane stores.
    # TODO(synk): training-mode dropout masks not implemented (eval semantics only).
    logits = jnp.dot(x.astype(jnp.float32), params["fc_w"]) + params["fc_b"]
    return logits.reshape(B, S, cfg["num_labels"])


# ------------------------------------------------------------------
if __name__ == "__main__":
    cfg = dict(
        vocab_size=100,
        hidden_size=32,
        num_heads=4,
        num_layers=2,
        intermediate_size=64,
        max_position=64,
        type_vocab_size=2,
        num_labels=5,
    )
    B, S = 2, 8

    key = jax.random.PRNGKey(0)
    k_param, k_ids, k_tt = jax.random.split(key, 3)
    params = init_params(k_param, cfg)

    input_ids = jax.random.randint(k_ids, (B, S), 0, cfg["vocab_size"], dtype=jnp.int32)
    token_type_ids = jax.random.randint(k_tt, (B, S), 0, cfg["type_vocab_size"], dtype=jnp.int32)
    attention_mask = jnp.ones((B, S), jnp.int32).at[1, 6:].set(0)   # pad out last tokens of batch 1

    out = biobert_forward(params, input_ids, token_type_ids, attention_mask, cfg)
    out = jax.block_until_ready(out)
    assert out.shape == (B, S, cfg["num_labels"])
    assert bool(jnp.all(jnp.isfinite(out)))
    print("KERNEL_OK")
</pallas_src>

<mosaic_0001>
module attributes {stable_mosaic.version = 11 : i64} {
  func.func @_ln_kernel(%arg0: i32, %arg1: memref<16x32xf32, #tpu.memory_space<vmem>>, %arg2: memref<1x32xf32, #tpu.memory_space<vmem>>, %arg3: memref<1x32xf32, #tpu.memory_space<vmem>>, %arg4: memref<16x32xbf16, #tpu.memory_space<vmem>>) attributes {dimension_semantics = [#tpu.dimension_semantics<parallel>], iteration_bounds = array<i64: 1>, scalar_prefetch = 0 : i64, scratch_operands = 0 : i64, tpu.core_type = #tpu.core_type<tc>, window_params = [{transform_indices = @transform_0, window_bounds = array<i64: 16, 32>}, {pipeline_mode = #tpu.pipeline_mode<synchronous>, transform_indices = @transform_1, window_bounds = array<i64: 1, 32>}, {pipeline_mode = #tpu.pipeline_mode<synchronous>, transform_indices = @transform_2, window_bounds = array<i64: 1, 32>}, {transform_indices = @transform_3, window_bounds = array<i64: 16, 32>}]} {
    %c0 = arith.constant 0 : index
    %c0_0 = arith.constant 0 : index
    %0 = vector.load %arg1[%c0, %c0_0] : memref<16x32xf32, #tpu.memory_space<vmem>>, vector<16x32xf32>
    %c0_1 = arith.constant 0 : index
    %c0_2 = arith.constant 0 : index
    %1 = vector.load %arg2[%c0_1, %c0_2] : memref<1x32xf32, #tpu.memory_space<vmem>>, vector<1x32xf32>
    %c0_3 = arith.constant 0 : index
    %c0_4 = arith.constant 0 : index
    %2 = vector.load %arg3[%c0_3, %c0_4] : memref<1x32xf32, #tpu.memory_space<vmem>>, vector<1x32xf32>
    %cst = arith.constant dense<0.000000e+00> : vector<16xf32>
    %3 = vector.multi_reduction <add>, %0, %cst [1] : vector<16x32xf32> to vector<16xf32>
    %4 = vector.shape_cast %3 : vector<16xf32> to vector<16x1xf32>
    %cst_5 = arith.constant 3.200000e+01 : f32
    %5 = vector.broadcast %cst_5 : f32 to vector<16x1xf32>
    %6 = arith.divf %4, %5 : vector<16x1xf32>
    %7 = vector.broadcast %6 : vector<16x1xf32> to vector<16x32xf32>
    %8 = arith.subf %0, %7 : vector<16x32xf32>
    %9 = arith.mulf %8, %8 : vector<16x32xf32>
    %cst_6 = arith.constant dense<0.000000e+00> : vector<16xf32>
    %10 = vector.multi_reduction <add>, %9, %cst_6 [1] : vector<16x32xf32> to vector<16xf32>
    %11 = vector.shape_cast %10 : vector<16xf32> to vector<16x1xf32>
    %cst_7 = arith.constant 3.200000e+01 : f32
    %12 = vector.broadcast %cst_7 : f32 to vector<16x1xf32>
    %13 = arith.divf %11, %12 : vector<16x1xf32>
    %cst_8 = arith.constant 9.99999996E-13 : f32
    %14 = vector.broadcast %cst_8 : f32 to vector<16x1xf32>
    %15 = arith.addf %13, %14 : vector<16x1xf32>
    %16 = math.rsqrt %15 : vector<16x1xf32>
    %17 = vector.broadcast %16 : vector<16x1xf32> to vector<16x32xf32>
    %18 = arith.mulf %8, %17 : vector<16x32xf32>
    %19 = vector.broadcast %1 : vector<1x32xf32> to vector<16x32xf32>
    %20 = arith.mulf %18, %19 : vector<16x32xf32>
    %21 = vector.broadcast %2 : vector<1x32xf32> to vector<16x32xf32>
    %22 = arith.addf %20, %21 : vector<16x32xf32>
    %23 = arith.truncf %22 : vector<16x32xf32> to vector<16x32xbf16>
    %c0_9 = arith.constant 0 : index
    %c0_10 = arith.constant 0 : index
    %24 = vector.load %arg4[%c0_9, %c0_10] : memref<16x32xbf16, #tpu.memory_space<vmem>>, vector<16x32xbf16>
    tpu.vector_store %arg4[%c0_9, %c0_10], %23 {strides = array<i32>} : memref<16x32xbf16, #tpu.memory_space<vmem>>, vector<16x32xbf16>,
    return
  }
  func.func @transform_0(%arg0: i32) -> (i32, i32) {
    %c0_i32 = arith.constant 0 : i32
    %c0_i32_0 = arith.constant 0 : i32
    return %arg0, %c0_i32 : i32, i32
  }
  func.func @transform_1(%arg0: i32) -> (i32, i32) {
    %c0_i32 = arith.constant 0 : i32
    %c0_i32_0 = arith.constant 0 : i32
    %c0_i32_1 = arith.constant 0 : i32
    return %c0_i32, %c0_i32_0 : i32, i32
  }
  func.func @transform_2(%arg0: i32) -> (i32, i32) {
    %c0_i32 = arith.constant 0 : i32
    %c0_i32_0 = arith.constant 0 : i32
    %c0_i32_1 = arith.constant 0 : i32
    return %c0_i32, %c0_i32_0 : i32, i32
  }
  func.func @transform_3(%arg0: i32) -> (i32, i32) {
    %c0_i32 = arith.constant 0 : i32
    %c0_i32_0 = arith.constant 0 : i32
    return %arg0, %c0_i32 : i32, i32
  }
}

</mosaic_0001>

<bundles_post_ra>
// kernel: tpu_custom_call.1
= control target key start
LH: loop header
LB: loop body
LE: loop exit
PB: predicated region body
PF: predicated region fallthrough
CT: control target
= control target key end

     0   :  { %8 = vsyncpa [#allocation3], 0  ;;  %s274_s0 = inlined_call_operand.hbm [shape: f32[16,32], index: 0, kind: input, shape index: {}]   ;;  %s275_s1 = inlined_call_operand.hbm [shape: f32[1,32], index: 1, kind: input, shape index: {}]   ;;  %s276_s2 = inlined_call_operand.vmem [shape: f32[1,32], index: 2, kind: input, shape index: {}]   ;;  %s277_s3 = inlined_call_operand.hbm [shape: bf16[16,32], index: 3, kind: output, shape index: {}]  }
   0x1   :  { %9 = vsyncpa [#allocation6], 0 }
   0x2   :  { %10 = vsyncpa [#allocation4], 0  ;;  %s15_s14 = sshll.u32 %s274_s0, 4  ;;  %s230_s15 = smov [#allocation2]   ;;  %s16_s14 = int_to_ptr.hbm [resolvable:$true] %s15_s14 }
   0x3   :  { %s17_s16 = sshll.u32 %s230_s15, 4  ;;  %s29_s19 = sshll.u32 %s275_s1, 4  ;;  %s18_s16 = int_to_ptr.vmem [resolvable:$true] %s17_s16  ;;  %s30_s19 = int_to_ptr.hbm [resolvable:$true] %s29_s19 }
   0x4   :  { %s231_s20 = smov 128   ;;  %s232_s21 = smov 8  }
   0x5   :  { %23 = dma.hbm_to_vmem [thread:$0]  %s16_s14, 256, %s18_s16, [#allocation3], %s231_s20, %s231_s20, %s232_s21  }
   0x6   :  { %s233_s22 = smov [#allocation5]  }
   0x7   :  { %s31_s23 = sshll.u32 %s233_s22, 4  ;;  %s32_s23 = int_to_ptr.vmem [resolvable:$true] %s31_s23 }
   0x8   :  { %34 = dma.hbm_to_vmem [thread:$0]  %s30_s19, 16, %s32_s23, [#allocation6]  }
   0x9   :  { %224 = dma.done.wait [#allocation3], 256  }
   0xa   :  { %225 = vsyncadd [#allocation3], 4294967040 }
   0xb   :  { %226 = dma.done.wait [#allocation6], 16  }
   0xc   :  { %227 = vsyncadd [#allocation6], 4294967280  ;;  %vm49_vm0 = vcmask 261120   ;;  %v45_v0 = vld [vmem:[#allocation2] sm:$0xff]  ;;  %v46_v2 = vld [vmem:[#allocation2 + $0x8] sm:$0xff]  ;;  %v234_v4 = vmov 32.0  }
   0xd   :  { %v50_v1 = vsel %vm49_vm0, %v45_v0, 0.0  ;;  %v53_v3 = vsel %vm49_vm0, %v46_v2, 0.0  ;;  %146 = vrcp.f32 %v234_v4  ;;  %v144_v35 = vld [vmem:[#allocation5] ss:$0 sm:$0xff]  ;;  %v145_v38 = vld [vmem:[%s276_s2] ss:$0 sm:$0xff] }
   0xe   :  { %51 = vadd.xlane.f32.xlu0 %v50_v1  ;;  %vm113_vm7 = vcmask 257024   ;;  %s235_s24 = smov [#allocation7]   ;;  %s122_s2 = sshll.u32 %s277_s3, 4  ;;  %s123_s2 = int_to_ptr.hbm [resolvable:$true] %s122_s2 }
   0xf   :  { %s120_s25 = sshll.u32 %s235_s24, 4  ;;  %s236_s28 = smov 64   ;;  %s121_s25 = int_to_ptr.vmem [resolvable:$true] %s120_s25 }
  0x10   :  { %s237_s29 = smov 4  }
  0x13   :  { %v147_v5 = vpop.eup %146 }
  0x14   :  { %v57_v6 = vmul.f32 32.0, %v147_v5  ;;  %vm61_vm1 = vweird.f32 %v147_v5 }
  0x16   :  { %54 = vadd.xlane.f32.xlu0 %v53_v3  ;;  %v58_v7 = vsub.f32 1.0, %v57_v6 }
  0x18   :  { %v59_v8 = vmul.f32 %v147_v5, %v58_v7 }
  0x1a   :  { %v60_v9 = vadd.f32 %v147_v5, %v59_v8 }
  0x1c   :  { %v62_v10 = vsel %vm61_vm1, %v147_v5, %v60_v9 }
  0x81   :  { %v52_v11 = vpop.xlane.xlu0 %51 }
  0x82   :  { %v63_v12 = vmul.f32 %v62_v10, %v52_v11 }
  0x84   :  { %v65_v13 = vsub.f32 %v45_v0, %v63_v12 }
  0x86   :  { %v67_v14 = vmul.f32 %v65_v13, %v65_v13 }
  0x88   :  { %v69_v15 = vsel %vm49_vm0, %v67_v14, 0.0 }
  0x89   :  { %70 = vadd.xlane.f32.xlu1 %v69_v15  ;;  %v55_v16 = vpop.xlane.xlu0 %54 }
  0x8a   :  { %v64_v17 = vmul.f32 %v62_v10, %v55_v16 }
  0x8c   :  { %v66_v18 = vsub.f32 %v46_v2, %v64_v17 }
  0x8e   :  { %v68_v19 = vmul.f32 %v66_v18, %v66_v18 }
  0x90   :  { %v72_v20 = vsel %vm49_vm0, %v68_v19, 0.0 }
  0x91   :  { %73 = vadd.xlane.f32.xlu1 %v72_v20 }
  0xfc   :  { %v71_v21 = vpop.xlane.xlu1 %70 }
  0xfd   :  { %v75_v22 = vmul.f32 %v71_v21, %v62_v10 }
  0xff   :  { %v77_v23 = vadd.f32 1e-12, %v75_v22 }
 0x101   :  { %148 = vrsqrt.f32 %v77_v23  ;;  %vm85_vm3 = vweird.f32 %v77_v23 }
 0x104   :  { %v74_v24 = vpop.xlane.xlu1 %73 }
 0x105   :  { %v76_v25 = vmul.f32 %v74_v24, %v62_v10 }
 0x107   :  { %v149_v26 = vpop.eup %148  ;;  %v78_v27 = vadd.f32 1e-12, %v76_v25 }
 0x108   :  { %v80_v28 = vmul.f32 %v149_v26, %v77_v23  ;;  %vm86_vm2 = vweird.f32 %v149_v26 }
 0x109   :  { %150 = vrsqrt.f32 %v78_v27  ;;  %vm87_vm4 = vmor %vm85_vm3, %vm86_vm2  ;;  %vm95_vm6 = vweird.f32 %v78_v27 }
 0x10a   :  { %v81_v29 = vmul.f32 %v149_v26, %v80_v28 }
 0x10c   :  { %v82_v30 = vmul.f32 0.5, %v81_v29 }
 0x10e   :  { %v83_v31 = vsub.f32 1.5, %v82_v30 }
 0x10f   :  { %v151_v32 = vpop.eup %150 }
 0x110   :  { %v84_v33 = vmul.f32 %v149_v26, %v83_v31  ;;  %v90_v34 = vmul.f32 %v151_v32, %v78_v27  ;;  %vm96_vm5 = vweird.f32 %v151_v32 }
 0x111   :  { %vm97_vm8 = vmor %vm95_vm6, %vm96_vm5 }
 0x112   :  { %v88_v36 = vsel %vm87_vm4, %v149_v26, %v84_v33  ;;  %v91_v37 = vmul.f32 %v151_v32, %v90_v34 }
 0x113   :  { %v99_v39 = vmul.f32 %v88_v36, %v65_v13 }
 0x114   :  { %v92_v40 = vmul.f32 0.5, %v91_v37 }
 0x115   :  { %v104_v41 = vmul.f32 %v144_v35, %v99_v39 }
 0x116   :  { %v93_v42 = vsub.f32 1.5, %v92_v40 }
 0x117   :  { %v109_v43 = vadd.f32 %v145_v38, %v104_v41 }
 0x118   :  { %v94_v44 = vmul.f32 %v151_v32, %v93_v42 }
 0x119   :  { %v111_v45 = vpack.c.bf16 %v109_v43, %v109_v43 }
 0x11a   :  { %v98_v46 = vsel %vm97_vm8, %v151_v32, %v94_v44 }
 0x11b   :  { %v100_v47 = vmul.f32 %v98_v46, %v66_v18  ;;  %114 = vst.msk [vmem:[#allocation7] sm:$0xf] %vm113_vm7, %v111_v45 }
 0x11d   :  { %v105_v48 = vmul.f32 %v144_v35, %v100_v47 }
 0x11f   :  { %v110_v49 = vadd.f32 %v145_v38, %v105_v48 }
 0x121   :  { %v112_v50 = vpack.c.bf16 %v110_v49, %v110_v49 }
 0x123   :  { %115 = vst.msk [vmem:[#allocation7 + $0x4] sm:$0xf] %vm113_vm7, %v112_v50 }
 0x124   :  { %128 = dma.vmem_to_hbm [thread:$0]  %s121_s25, 128, %s123_s2, [#allocation4], %s236_s28, %s236_s28, %s237_s29  }
 0x125   :  { %228 = dma.done.wait [#allocation4], 128  }
 0x126   :  { %229 = vsyncadd [#allocation4], 4294967168 }
 0x127   :  { %133 = vsyncpa [#allocation3], 1 }
 0x128   :  { %134 = vsyncpa [#allocation6], 1 }
 0x129   :  { %135 = vsyncpa [#allocation4], 1 }

</bundles_post_ra>
